<compile_context>
chip_gen: v6e
topology: v6e:2x2x1
jax: 0.10.0
libtpu: 0.0.40
codegen_flags: <defaults>
</compile_context>

<pallas_src>
import jax
import jax.numpy as jnp
from jax.experimental import pallas as pl
from jax.experimental.pallas import tpu as pltpu

V_PAD = 128   # vocab padded to one lane width per direction
C_PAD = 128   # classifier output padded to lane width (lane-dense stores)


def _interleave_gates(wf, wb, H):
    """Interleave per-gate column blocks of two (R, 4H) matrices into (R, 8H)
    with column order [i_f, i_b, f_f, f_b, g_f, g_b, o_f, o_b]."""
    parts = []
    for g in range(4):
        parts.append(wf[:, g * H:(g + 1) * H])
        parts.append(wb[:, g * H:(g + 1) * H])
    return jnp.concatenate(parts, axis=1)


# ---------------------------------------------------------------------------
# Fused forward: embedding + bidirectional LSTM + classifier, one kernel body.
# ---------------------------------------------------------------------------
def ner_forward(x_ids, params):
    T, B = x_ids.shape
    V, E = params["embedding"].shape
    H = params["w_hh_f"].shape[0]
    C = params["w_cls"].shape[1]
    TB = T * B
    VP, CP = V_PAD, C_PAD

    # ---- parameter-only preprocessing (could be hoisted to param-load time) ----
    emb = params["embedding"]
    zV = jnp.zeros((V, 4 * H), jnp.float32)
    zH = jnp.zeros((H, 4 * H), jnp.float32)

    # Fused embedding-gather + input-projection tables, biases folded in.
    xe_f = emb @ params["w_ih_f"] + params["b_f"]                    # (V, 4H)
    xe_b = emb @ params["w_ih_b"] + params["b_b"]                    # (V, 4H)
    tab_f = _interleave_gates(xe_f, zV, H)                           # fwd gate slots
    tab_b = _interleave_gates(zV, xe_b, H)                           # bwd gate slots
    w_xe = jnp.zeros((2 * VP, 8 * H), jnp.float32)
    w_xe = w_xe.at[:V].set(tab_f).at[VP:VP + V].set(tab_b)           # (2VP, 8H)

    # Block-diagonal recurrent weights, interleaved gate columns.
    w_hh = jnp.concatenate(
        [_interleave_gates(params["w_hh_f"], zH, H),
         _interleave_gates(zH, params["w_hh_b"], H)], axis=0)        # (2H, 8H)

    # Classifier, lane-padded to 128 outputs.
    w_cls = jnp.zeros((2 * H, CP), jnp.float32).at[:, :C].set(params["w_cls"])
    b_cls = jnp.zeros((1, CP), jnp.float32).at[:, :C].set(params["b_cls"])

    # ---- token ids: pre-broadcast across lanes; backward half time-reversed
    #      and offset by VP so a single iota compare builds both one-hots -------
    ids_f = x_ids.reshape(TB, 1).astype(jnp.int32)
    ids_b = x_ids[::-1].reshape(TB, 1).astype(jnp.int32) + VP
    ids = jnp.concatenate(
        [jnp.broadcast_to(ids_f, (TB, VP)),
         jnp.broadcast_to(ids_b, (TB, VP))], axis=1)                 # (TB, 2VP) i32

    def kernel(ids_ref, wxe_ref, whh_ref, wcls_ref, bcls_ref, out_ref):
        # 1) Both directions' embedding gather + input projection + bias as a
        #    single one-hot matmul (each one-hot row has exactly two ones).
        onehot = (ids_ref[...] ==
                  jax.lax.broadcasted_iota(jnp.int32, (TB, 2 * VP), 1)
                  ).astype(jnp.float32)                              # (TB, 2VP)
        gx = jnp.dot(onehot, wxe_ref[...],
                     preferred_element_type=jnp.float32)             # (TB, 8H)

        whh = whh_ref[...]                                           # (2H, 8H)

        # 2) Recurrence: both directions fused in one (B,2H)@(2H,8H) matmul per
        #    step; state and per-step hiddens stay in vregs (no VMEM scratch).
        h = jnp.zeros((B, 2 * H), jnp.float32)                       # [h_f | h_b]
        c = jnp.zeros((B, 2 * H), jnp.float32)
        h_steps = []
        for s in range(T):
            gates = gx[s * B:(s + 1) * B, :] + jnp.dot(
                h, whh, preferred_element_type=jnp.float32)          # (B, 8H)
            sg = jax.nn.sigmoid(gates)                               # full-width
            i_g = sg[:, 0:2 * H]
            f_g = sg[:, 2 * H:4 * H]
            o_g = sg[:, 6 * H:8 * H]
            g_g = jnp.tanh(gates[:, 4 * H:6 * H])
            c = f_g * c + i_g * g_g
            h = o_g * jnp.tanh(c)
            h_steps.append(h)

        # 3) Re-time the backward halves (lane select, no rotate) and run the
        #    fused classifier + bias; lane-dense (TB, 128) store.
        lane = jax.lax.broadcasted_iota(jnp.int32, (B, 2 * H), 1)
        rows = [jnp.where(lane < H, h_steps[t], h_steps[T - 1 - t])
                for t in range(T)]
        hs = jnp.concatenate(rows, axis=0)                           # (TB, 2H)
        out_ref[...] = (jnp.dot(hs, wcls_ref[...],
                                preferred_element_type=jnp.float32)
                        + bcls_ref[...])                             # (TB, CP)

    out = pl.pallas_call(
        kernel,
        out_shape=jax.ShapeDtypeStruct((TB, CP), jnp.float32),
        grid_spec=pltpu.PrefetchScalarGridSpec(
            num_scalar_prefetch=0,
            grid=(1,),                                   # single fused body
            in_specs=[
                pl.BlockSpec((TB, 2 * VP), lambda i: (0, 0)),     # ids (broadcast)
                pl.BlockSpec((2 * VP, 8 * H), lambda i: (0, 0)),  # fused gather/proj table
                pl.BlockSpec((2 * H, 8 * H), lambda i: (0, 0)),   # block-diag W_hh
                pl.BlockSpec((2 * H, CP), lambda i: (0, 0)),      # W_cls (padded)
                pl.BlockSpec((1, CP), lambda i: (0, 0)),          # b_cls (padded)
            ],
            out_specs=pl.BlockSpec((TB, CP), lambda i: (0, 0)),
        ),
        compiler_params=pltpu.CompilerParams(
            dimension_semantics=("arbitrary",)),
    )(ids, w_xe, w_hh, w_cls, b_cls)

    # Only trivial post-processing left: reshape + drop lane padding.
    return out.reshape(T, B, CP)[:, :, :C]                           # (T, B, C)


# ---------------------------------------------------------------------------
# Pure-JAX reference (verification)
# ---------------------------------------------------------------------------
def ner_forward_ref(x_ids, params):
    emb = jnp.take(params["embedding"], x_ids, axis=0)

    def lstm_scan(x_seq, w_ih, w_hh, b):
        T, B, _ = x_seq.shape
        H = w_hh.shape[0]

        def step(carry, x_t):
            h, c = carry
            gates = x_t @ w_ih + h @ w_hh + b[0]
            i = jax.nn.sigmoid(gates[:, 0:H])
            f = jax.nn.sigmoid(gates[:, H:2 * H])
            g = jnp.tanh(gates[:, 2 * H:3 * H])
            o = jax.nn.sigmoid(gates[:, 3 * H:4 * H])
            c = f * c + i * g
            h = o * jnp.tanh(c)
            return (h, c), h

        init = (jnp.zeros((B, H), jnp.float32), jnp.zeros((B, H), jnp.float32))
        _, hs = jax.lax.scan(step, init, x_seq)
        return hs

    o_f = lstm_scan(emb, params["w_ih_f"], params["w_hh_f"], params["b_f"])
    o_b = lstm_scan(emb[::-1], params["w_ih_b"], params["w_hh_b"],
                    params["b_b"])[::-1]
    o = jnp.concatenate([o_f, o_b], axis=-1)
    return o @ params["w_cls"] + params["b_cls"][0]


# ---------------------------------------------------------------------------
def make_params(key, vocab_size, num_classes, E, H):
    ks = jax.random.split(key, 12)
    k_lstm = 1.0 / jnp.sqrt(H)
    k_cls = 1.0 / jnp.sqrt(2 * H)

    def u(k, shape, scale):
        return jax.random.uniform(k, shape, jnp.float32, -scale, scale)

    return {
        "embedding": jax.random.normal(ks[0], (vocab_size, E), jnp.float32),
        # stored transposed vs PyTorch ((4H,E)->(E,4H)); biases b_ih + b_hh folded
        "w_ih_f": u(ks[1], (E, 4 * H), k_lstm),
        "w_hh_f": u(ks[2], (H, 4 * H), k_lstm),
        "b_f":    u(ks[3], (1, 4 * H), k_lstm) + u(ks[4], (1, 4 * H), k_lstm),
        "w_ih_b": u(ks[5], (E, 4 * H), k_lstm),
        "w_hh_b": u(ks[6], (H, 4 * H), k_lstm),
        "b_b":    u(ks[7], (1, 4 * H), k_lstm) + u(ks[8], (1, 4 * H), k_lstm),
        "w_cls":  u(ks[9], (2 * H, num_classes), k_cls),
        "b_cls":  u(ks[10], (1, num_classes), k_cls),
    }


if __name__ == "__main__":
    VOCAB, NUM_CLASSES = 50, 9
    E, H = 32, 32        # embedding_dim, hidden_dim
    T, B = 8, 2          # seq_len, batch (batch_first=False like nn.LSTM default)

    key = jax.random.PRNGKey(0)
    k_p, k_x = jax.random.split(key)
    params = make_params(k_p, VOCAB, NUM_CLASSES, E, H)
    x_ids = jax.random.randint(k_x, (T, B), 0, VOCAB, dtype=jnp.int32)

    out = jax.block_until_ready(ner_forward(x_ids, params))
    ref = jax.block_until_ready(ner_forward_ref(x_ids, params))

    assert out.shape == (T, B, NUM_CLASSES)
    assert jnp.allclose(out, ref, atol=1e-4, rtol=1e-4)
    print("KERNEL_OK")
</pallas_src>

<mosaic_0001>
module attributes {stable_mosaic.version = 11 : i64} {
  func.func @kernel(%arg0: i32, %arg1: memref<16x256xi32, #tpu.memory_space<vmem>>, %arg2: memref<256x256xf32, #tpu.memory_space<vmem>>, %arg3: memref<64x256xf32, #tpu.memory_space<vmem>>, %arg4: memref<64x128xf32, #tpu.memory_space<vmem>>, %arg5: memref<1x128xf32, #tpu.memory_space<vmem>>, %arg6: memref<16x128xf32, #tpu.memory_space<vmem>>) attributes {dimension_semantics = [#tpu.dimension_semantics<arbitrary>], iteration_bounds = array<i64: 1>, scalar_prefetch = 0 : i64, scratch_operands = 0 : i64, tpu.core_type = #tpu.core_type<tc>, window_params = [{pipeline_mode = #tpu.pipeline_mode<synchronous>, transform_indices = @transform_0, window_bounds = array<i64: 16, 256>}, {pipeline_mode = #tpu.pipeline_mode<synchronous>, transform_indices = @transform_1, window_bounds = array<i64: 256, 256>}, {pipeline_mode = #tpu.pipeline_mode<synchronous>, transform_indices = @transform_2, window_bounds = array<i64: 64, 256>}, {pipeline_mode = #tpu.pipeline_mode<synchronous>, transform_indices = @transform_3, window_bounds = array<i64: 64, 128>}, {pipeline_mode = #tpu.pipeline_mode<synchronous>, transform_indices = @transform_4, window_bounds = array<i64: 1, 128>}, {pipeline_mode = #tpu.pipeline_mode<synchronous>, transform_indices = @transform_5, window_bounds = array<i64: 16, 128>}]} {
    %c0 = arith.constant 0 : index
    %c0_0 = arith.constant 0 : index
    %0 = vector.load %arg1[%c0, %c0_0] : memref<16x256xi32, #tpu.memory_space<vmem>>, vector<16x256xi32>
    %1 = tpu.iota {dimensions = array<i32: 1>} : vector<16x256xi32>
    %2 = arith.cmpi eq, %0, %1 : vector<16x256xi32>
    %3 = arith.extui %2 : vector<16x256xi1> to vector<16x256xi32>
    %4 = arith.sitofp %3 : vector<16x256xi32> to vector<16x256xf32>
    %c0_1 = arith.constant 0 : index
    %c0_2 = arith.constant 0 : index
    %5 = vector.load %arg2[%c0_1, %c0_2] : memref<256x256xf32, #tpu.memory_space<vmem>>, vector<256x256xf32>
    %cst = arith.constant dense<0.000000e+00> : vector<16x256xf32>
    %6 = tpu.matmul %4, %5, %cst {dimension_numbers = #tpu.dot_dimension_numbers<[1], [0], [0], [1], [0, 0, 1, 1], [], []>} : vector<16x256xf32>, vector<256x256xf32>, vector<16x256xf32> -> vector<16x256xf32>
    %c0_3 = arith.constant 0 : index
    %c0_4 = arith.constant 0 : index
    %7 = vector.load %arg3[%c0_3, %c0_4] : memref<64x256xf32, #tpu.memory_space<vmem>>, vector<64x256xf32>
    %cst_5 = arith.constant 0.000000e+00 : f32
    %8 = vector.broadcast %cst_5 : f32 to vector<2x64xf32>
    %cst_6 = arith.constant 0.000000e+00 : f32
    %9 = vector.broadcast %cst_6 : f32 to vector<2x64xf32>
    %10 = vector.extract_strided_slice %6 {offsets = [0, 0], sizes = [2, 256], strides = [1, 1]} : vector<16x256xf32> to vector<2x256xf32>
    %cst_7 = arith.constant dense<0.000000e+00> : vector<2x256xf32>
    %11 = tpu.matmul %8, %7, %cst_7 {dimension_numbers = #tpu.dot_dimension_numbers<[1], [0], [0], [1], [0, 0, 1, 1], [], []>} : vector<2x64xf32>, vector<64x256xf32>, vector<2x256xf32> -> vector<2x256xf32>
    %12 = arith.addf %10, %11 : vector<2x256xf32>
    %13 = arith.negf %12 : vector<2x256xf32>
    %14 = math.exp %13 : vector<2x256xf32>
    %cst_8 = arith.constant 1.000000e+00 : f32
    %15 = vector.broadcast %cst_8 : f32 to vector<2x256xf32>
    %16 = arith.addf %15, %14 : vector<2x256xf32>
    %17 = arith.divf %15, %16 : vector<2x256xf32>
    %18 = vector.extract_strided_slice %17 {offsets = [0, 0], sizes = [2, 64], strides = [1, 1]} : vector<2x256xf32> to vector<2x64xf32>
    %19 = vector.extract_strided_slice %17 {offsets = [0, 64], sizes = [2, 64], strides = [1, 1]} : vector<2x256xf32> to vector<2x64xf32>
    %20 = vector.extract_strided_slice %17 {offsets = [0, 192], sizes = [2, 64], strides = [1, 1]} : vector<2x256xf32> to vector<2x64xf32>
    %21 = vector.extract_strided_slice %12 {offsets = [0, 128], sizes = [2, 64], strides = [1, 1]} : vector<2x256xf32> to vector<2x64xf32>
    %22 = math.tanh %21 : vector<2x64xf32>
    %23 = arith.mulf %19, %9 : vector<2x64xf32>
    %24 = arith.mulf %18, %22 : vector<2x64xf32>
    %25 = arith.addf %23, %24 : vector<2x64xf32>
    %26 = math.tanh %25 : vector<2x64xf32>
    %27 = arith.mulf %20, %26 : vector<2x64xf32>
    %28 = vector.extract_strided_slice %6 {offsets = [2, 0], sizes = [2, 256], strides = [1, 1]} : vector<16x256xf32> to vector<2x256xf32>
    %cst_9 = arith.constant dense<0.000000e+00> : vector<2x256xf32>
    %29 = tpu.matmul %27, %7, %cst_9 {dimension_numbers = #tpu.dot_dimension_numbers<[1], [0], [0], [1], [0, 0, 1, 1], [], []>} : vector<2x64xf32>, vector<64x256xf32>, vector<2x256xf32> -> vector<2x256xf32>
    %30 = arith.addf %28, %29 : vector<2x256xf32>
    %31 = arith.negf %30 : vector<2x256xf32>
    %32 = math.exp %31 : vector<2x256xf32>
    %cst_10 = arith.constant 1.000000e+00 : f32
    %33 = vector.broadcast %cst_10 : f32 to vector<2x256xf32>
    %34 = arith.addf %33, %32 : vector<2x256xf32>
    %35 = arith.divf %33, %34 : vector<2x256xf32>
    %36 = vector.extract_strided_slice %35 {offsets = [0, 0], sizes = [2, 64], strides = [1, 1]} : vector<2x256xf32> to vector<2x64xf32>
    %37 = vector.extract_strided_slice %35 {offsets = [0, 64], sizes = [2, 64], strides = [1, 1]} : vector<2x256xf32> to vector<2x64xf32>
    %38 = vector.extract_strided_slice %35 {offsets = [0, 192], sizes = [2, 64], strides = [1, 1]} : vector<2x256xf32> to vector<2x64xf32>
    %39 = vector.extract_strided_slice %30 {offsets = [0, 128], sizes = [2, 64], strides = [1, 1]} : vector<2x256xf32> to vector<2x64xf32>
    %40 = math.tanh %39 : vector<2x64xf32>
    %41 = arith.mulf %37, %25 : vector<2x64xf32>
    %42 = arith.mulf %36, %40 : vector<2x64xf32>
    %43 = arith.addf %41, %42 : vector<2x64xf32>
    %44 = math.tanh %43 : vector<2x64xf32>
    %45 = arith.mulf %38, %44 : vector<2x64xf32>
    %46 = vector.extract_strided_slice %6 {offsets = [4, 0], sizes = [2, 256], strides = [1, 1]} : vector<16x256xf32> to vector<2x256xf32>
    %cst_11 = arith.constant dense<0.000000e+00> : vector<2x256xf32>
    %47 = tpu.matmul %45, %7, %cst_11 {dimension_numbers = #tpu.dot_dimension_numbers<[1], [0], [0], [1], [0, 0, 1, 1], [], []>} : vector<2x64xf32>, vector<64x256xf32>, vector<2x256xf32> -> vector<2x256xf32>
    %48 = arith.addf %46, %47 : vector<2x256xf32>
    %49 = arith.negf %48 : vector<2x256xf32>
    %50 = math.exp %49 : vector<2x256xf32>
    %cst_12 = arith.constant 1.000000e+00 : f32
    %51 = vector.broadcast %cst_12 : f32 to vector<2x256xf32>
    %52 = arith.addf %51, %50 : vector<2x256xf32>
    %53 = arith.divf %51, %52 : vector<2x256xf32>
    %54 = vector.extract_strided_slice %53 {offsets = [0, 0], sizes = [2, 64], strides = [1, 1]} : vector<2x256xf32> to vector<2x64xf32>
    %55 = vector.extract_strided_slice %53 {offsets = [0, 64], sizes = [2, 64], strides = [1, 1]} : vector<2x256xf32> to vector<2x64xf32>
    %56 = vector.extract_strided_slice %53 {offsets = [0, 192], sizes = [2, 64], strides = [1, 1]} : vector<2x256xf32> to vector<2x64xf32>
    %57 = vector.extract_strided_slice %48 {offsets = [0, 128], sizes = [2, 64], strides = [1, 1]} : vector<2x256xf32> to vector<2x64xf32>
    %58 = math.tanh %57 : vector<2x64xf32>
    %59 = arith.mulf %55, %43 : vector<2x64xf32>
    %60 = arith.mulf %54, %58 : vector<2x64xf32>
    %61 = arith.addf %59, %60 : vector<2x64xf32>
    %62 = math.tanh %61 : vector<2x64xf32>
    %63 = arith.mulf %56, %62 : vector<2x64xf32>
    %64 = vector.extract_strided_slice %6 {offsets = [6, 0], sizes = [2, 256], strides = [1, 1]} : vector<16x256xf32> to vector<2x256xf32>
    %cst_13 = arith.constant dense<0.000000e+00> : vector<2x256xf32>
    %65 = tpu.matmul %63, %7, %cst_13 {dimension_numbers = #tpu.dot_dimension_numbers<[1], [0], [0], [1], [0, 0, 1, 1], [], []>} : vector<2x64xf32>, vector<64x256xf32>, vector<2x256xf32> -> vector<2x256xf32>
    %66 = arith.addf %64, %65 : vector<2x256xf32>
    %67 = arith.negf %66 : vector<2x256xf32>
    %68 = math.exp %67 : vector<2x256xf32>
    %cst_14 = arith.constant 1.000000e+00 : f32
    %69 = vector.broadcast %cst_14 : f32 to vector<2x256xf32>
    %70 = arith.addf %69, %68 : vector<2x256xf32>
    %71 = arith.divf %69, %70 : vector<2x256xf32>
    %72 = vector.extract_strided_slice %71 {offsets = [0, 0], sizes = [2, 64], strides = [1, 1]} : vector<2x256xf32> to vector<2x64xf32>
    %73 = vector.extract_strided_slice %71 {offsets = [0, 64], sizes = [2, 64], strides = [1, 1]} : vector<2x256xf32> to vector<2x64xf32>
    %74 = vector.extract_strided_slice %71 {offsets = [0, 192], sizes = [2, 64], strides = [1, 1]} : vector<2x256xf32> to vector<2x64xf32>
    %75 = vector.extract_strided_slice %66 {offsets = [0, 128], sizes = [2, 64], strides = [1, 1]} : vector<2x256xf32> to vector<2x64xf32>
    %76 = math.tanh %75 : vector<2x64xf32>
    %77 = arith.mulf %73, %61 : vector<2x64xf32>
    %78 = arith.mulf %72, %76 : vector<2x64xf32>
    %79 = arith.addf %77, %78 : vector<2x64xf32>
    %80 = math.tanh %79 : vector<2x64xf32>
    %81 = arith.mulf %74, %80 : vector<2x64xf32>
    %82 = vector.extract_strided_slice %6 {offsets = [8, 0], sizes = [2, 256], strides = [1, 1]} : vector<16x256xf32> to vector<2x256xf32>
    %cst_15 = arith.constant dense<0.000000e+00> : vector<2x256xf32>
    %83 = tpu.matmul %81, %7, %cst_15 {dimension_numbers = #tpu.dot_dimension_numbers<[1], [0], [0], [1], [0, 0, 1, 1], [], []>} : vector<2x64xf32>, vector<64x256xf32>, vector<2x256xf32> -> vector<2x256xf32>
    %84 = arith.addf %82, %83 : vector<2x256xf32>
    %85 = arith.negf %84 : vector<2x256xf32>
    %86 = math.exp %85 : vector<2x256xf32>
    %cst_16 = arith.constant 1.000000e+00 : f32
    %87 = vector.broadcast %cst_16 : f32 to vector<2x256xf32>
    %88 = arith.addf %87, %86 : vector<2x256xf32>
    %89 = arith.divf %87, %88 : vector<2x256xf32>
    %90 = vector.extract_strided_slice %89 {offsets = [0, 0], sizes = [2, 64], strides = [1, 1]} : vector<2x256xf32> to vector<2x64xf32>
    %91 = vector.extract_strided_slice %89 {offsets = [0, 64], sizes = [2, 64], strides = [1, 1]} : vector<2x256xf32> to vector<2x64xf32>
    %92 = vector.extract_strided_slice %89 {offsets = [0, 192], sizes = [2, 64], strides = [1, 1]} : vector<2x256xf32> to vector<2x64xf32>
    %93 = vector.extract_strided_slice %84 {offsets = [0, 128], sizes = [2, 64], strides = [1, 1]} : vector<2x256xf32> to vector<2x64xf32>
    %94 = math.tanh %93 : vector<2x64xf32>
    %95 = arith.mulf %91, %79 : vector<2x64xf32>
    %96 = arith.mulf %90, %94 : vector<2x64xf32>
    %97 = arith.addf %95, %96 : vector<2x64xf32>
    %98 = math.tanh %97 : vector<2x64xf32>
    %99 = arith.mulf %92, %98 : vector<2x64xf32>
    %100 = vector.extract_strided_slice %6 {offsets = [10, 0], sizes = [2, 256], strides = [1, 1]} : vector<16x256xf32> to vector<2x256xf32>
    %cst_17 = arith.constant dense<0.000000e+00> : vector<2x256xf32>
    %101 = tpu.matmul %99, %7, %cst_17 {dimension_numbers = #tpu.dot_dimension_numbers<[1], [0], [0], [1], [0, 0, 1, 1], [], []>} : vector<2x64xf32>, vector<64x256xf32>, vector<2x256xf32> -> vector<2x256xf32>
    %102 = arith.addf %100, %101 : vector<2x256xf32>
    %103 = arith.negf %102 : vector<2x256xf32>
    %104 = math.exp %103 : vector<2x256xf32>
    %cst_18 = arith.constant 1.000000e+00 : f32
    %105 = vector.broadcast %cst_18 : f32 to vector<2x256xf32>
    %106 = arith.addf %105, %104 : vector<2x256xf32>
    %107 = arith.divf %105, %106 : vector<2x256xf32>
    %108 = vector.extract_strided_slice %107 {offsets = [0, 0], sizes = [2, 64], strides = [1, 1]} : vector<2x256xf32> to vector<2x64xf32>
    %109 = vector.extract_strided_slice %107 {offsets = [0, 64], sizes = [2, 64], strides = [1, 1]} : vector<2x256xf32> to vector<2x64xf32>
    %110 = vector.extract_strided_slice %107 {offsets = [0, 192], sizes = [2, 64], strides = [1, 1]} : vector<2x256xf32> to vector<2x64xf32>
    %111 = vector.extract_strided_slice %102 {offsets = [0, 128], sizes = [2, 64], strides = [1, 1]} : vector<2x256xf32> to vector<2x64xf32>
    %112 = math.tanh %111 : vector<2x64xf32>
    %113 = arith.mulf %109, %97 : vector<2x64xf32>
    %114 = arith.mulf %108, %112 : vector<2x64xf32>
    %115 = arith.addf %113, %114 : vector<2x64xf32>
    %116 = math.tanh %115 : vector<2x64xf32>
    %117 = arith.mulf %110, %116 : vector<2x64xf32>
    %118 = vector.extract_strided_slice %6 {offsets = [12, 0], sizes = [2, 256], strides = [1, 1]} : vector<16x256xf32> to vector<2x256xf32>
    %cst_19 = arith.constant dense<0.000000e+00> : vector<2x256xf32>
    %119 = tpu.matmul %117, %7, %cst_19 {dimension_numbers = #tpu.dot_dimension_numbers<[1], [0], [0], [1], [0, 0, 1, 1], [], []>} : vector<2x64xf32>, vector<64x256xf32>, vector<2x256xf32> -> vector<2x256xf32>
    %120 = arith.addf %118, %119 : vector<2x256xf32>
    %121 = arith.negf %120 : vector<2x256xf32>
    %122 = math.exp %121 : vector<2x256xf32>
    %cst_20 = arith.constant 1.000000e+00 : f32
    %123 = vector.broadcast %cst_20 : f32 to vector<2x256xf32>
    %124 = arith.addf %123, %122 : vector<2x256xf32>
    %125 = arith.divf %123, %124 : vector<2x256xf32>
    %126 = vector.extract_strided_slice %125 {offsets = [0, 0], sizes = [2, 64], strides = [1, 1]} : vector<2x256xf32> to vector<2x64xf32>
    %127 = vector.extract_strided_slice %125 {offsets = [0, 64], sizes = [2, 64], strides = [1, 1]} : vector<2x256xf32> to vector<2x64xf32>
    %128 = vector.extract_strided_slice %125 {offsets = [0, 192], sizes = [2, 64], strides = [1, 1]} : vector<2x256xf32> to vector<2x64xf32>
    %129 = vector.extract_strided_slice %120 {offsets = [0, 128], sizes = [2, 64], strides = [1, 1]} : vector<2x256xf32> to vector<2x64xf32>
    %130 = math.tanh %129 : vector<2x64xf32>
    %131 = arith.mulf %127, %115 : vector<2x64xf32>
    %132 = arith.mulf %126, %130 : vector<2x64xf32>
    %133 = arith.addf %131, %132 : vector<2x64xf32>
    %134 = math.tanh %133 : vector<2x64xf32>
    %135 = arith.mulf %128, %134 : vector<2x64xf32>
    %136 = vector.extract_strided_slice %6 {offsets = [14, 0], sizes = [2, 256], strides = [1, 1]} : vector<16x256xf32> to vector<2x256xf32>
    %cst_21 = arith.constant dense<0.000000e+00> : vector<2x256xf32>
    %137 = tpu.matmul %135, %7, %cst_21 {dimension_numbers = #tpu.dot_dimension_numbers<[1], [0], [0], [1], [0, 0, 1, 1], [], []>} : vector<2x64xf32>, vector<64x256xf32>, vector<2x256xf32> -> vector<2x256xf32>
    %138 = arith.addf %136, %137 : vector<2x256xf32>
    %139 = arith.negf %138 : vector<2x256xf32>
    %140 = math.exp %139 : vector<2x256xf32>
    %cst_22 = arith.constant 1.000000e+00 : f32
    %141 = vector.broadcast %cst_22 : f32 to vector<2x256xf32>
    %142 = arith.addf %141, %140 : vector<2x256xf32>
    %143 = arith.divf %141, %142 : vector<2x256xf32>
    %144 = vector.extract_strided_slice %143 {offsets = [0, 0], sizes = [2, 64], strides = [1, 1]} : vector<2x256xf32> to vector<2x64xf32>
    %145 = vector.extract_strided_slice %143 {offsets = [0, 64], sizes = [2, 64], strides = [1, 1]} : vector<2x256xf32> to vector<2x64xf32>
    %146 = vector.extract_strided_slice %143 {offsets = [0, 192], sizes = [2, 64], strides = [1, 1]} : vector<2x256xf32> to vector<2x64xf32>
    %147 = vector.extract_strided_slice %138 {offsets = [0, 128], sizes = [2, 64], strides = [1, 1]} : vector<2x256xf32> to vector<2x64xf32>
    %148 = math.tanh %147 : vector<2x64xf32>
    %149 = arith.mulf %145, %133 : vector<2x64xf32>
    %150 = arith.mulf %144, %148 : vector<2x64xf32>
    %151 = arith.addf %149, %150 : vector<2x64xf32>
    %152 = math.tanh %151 : vector<2x64xf32>
    %153 = arith.mulf %146, %152 : vector<2x64xf32>
    %154 = tpu.iota {dimensions = array<i32: 1>} : vector<2x64xi32>
    %c32_i32 = arith.constant 32 : i32
    %155 = vector.broadcast %c32_i32 : i32 to vector<2x64xi32>
    %156 = arith.cmpi slt, %154, %155 : vector<2x64xi32>
    %157 = arith.select %156, %27, %153 : vector<2x64xi1>, vector<2x64xf32>
    %c32_i32_23 = arith.constant 32 : i32
    %158 = vector.broadcast %c32_i32_23 : i32 to vector<2x64xi32>
    %159 = arith.cmpi slt, %154, %158 : vector<2x64xi32>
    %160 = arith.select %159, %45, %135 : vector<2x64xi1>, vector<2x64xf32>
    %c32_i32_24 = arith.constant 32 : i32
    %161 = vector.broadcast %c32_i32_24 : i32 to vector<2x64xi32>
    %162 = arith.cmpi slt, %154, %161 : vector<2x64xi32>
    %163 = arith.select %162, %63, %117 : vector<2x64xi1>, vector<2x64xf32>
    %c32_i32_25 = arith.constant 32 : i32
    %164 = vector.broadcast %c32_i32_25 : i32 to vector<2x64xi32>
    %165 = arith.cmpi slt, %154, %164 : vector<2x64xi32>
    %166 = arith.select %165, %81, %99 : vector<2x64xi1>, vector<2x64xf32>
    %c32_i32_26 = arith.constant 32 : i32
    %167 = vector.broadcast %c32_i32_26 : i32 to vector<2x64xi32>
    %168 = arith.cmpi slt, %154, %167 : vector<2x64xi32>
    %169 = arith.select %168, %99, %81 : vector<2x64xi1>, vector<2x64xf32>
    %c32_i32_27 = arith.constant 32 : i32
    %170 = vector.broadcast %c32_i32_27 : i32 to vector<2x64xi32>
    %171 = arith.cmpi slt, %154, %170 : vector<2x64xi32>
    %172 = arith.select %171, %117, %63 : vector<2x64xi1>, vector<2x64xf32>
    %c32_i32_28 = arith.constant 32 : i32
    %173 = vector.broadcast %c32_i32_28 : i32 to vector<2x64xi32>
    %174 = arith.cmpi slt, %154, %173 : vector<2x64xi32>
    %175 = arith.select %174, %135, %45 : vector<2x64xi1>, vector<2x64xf32>
    %c32_i32_29 = arith.constant 32 : i32
    %176 = vector.broadcast %c32_i32_29 : i32 to vector<2x64xi32>
    %177 = arith.cmpi slt, %154, %176 : vector<2x64xi32>
    %178 = arith.select %177, %153, %27 : vector<2x64xi1>, vector<2x64xf32>
    %179 = tpu.concatenate %157, %160, %163, %166, %169, %172, %175, %178 in 0 : vector<2x64xf32>, vector<2x64xf32>, vector<2x64xf32>, vector<2x64xf32>, vector<2x64xf32>, vector<2x64xf32>, vector<2x64xf32>, vector<2x64xf32> -> vector<16x64xf32>
    %c0_30 = arith.constant 0 : index
    %c0_31 = arith.constant 0 : index
    %180 = vector.load %arg4[%c0_30, %c0_31] : memref<64x128xf32, #tpu.memory_space<vmem>>, vector<64x128xf32>
    %cst_32 = arith.constant dense<0.000000e+00> : vector<16x128xf32>
    %181 = tpu.matmul %179, %180, %cst_32 {dimension_numbers = #tpu.dot_dimension_numbers<[1], [0], [0], [1], [0, 0, 1, 1], [], []>} : vector<16x64xf32>, vector<64x128xf32>, vector<16x128xf32> -> vector<16x128xf32>
    %c0_33 = arith.constant 0 : index
    %c0_34 = arith.constant 0 : index
    %182 = vector.load %arg5[%c0_33, %c0_34] : memref<1x128xf32, #tpu.memory_space<vmem>>, vector<1x128xf32>
    %183 = vector.broadcast %182 : vector<1x128xf32> to vector<16x128xf32>
    %184 = arith.addf %181, %183 : vector<16x128xf32>
    %c0_35 = arith.constant 0 : index
    %c0_36 = arith.constant 0 : index
    %185 = vector.load %arg6[%c0_35, %c0_36] : memref<16x128xf32, #tpu.memory_space<vmem>>, vector<16x128xf32>
    tpu.vector_store %arg6[%c0_35, %c0_36], %184 {strides = array<i32>} : memref<16x128xf32, #tpu.memory_space<vmem>>, vector<16x128xf32>,
    return
  }
  func.func @transform_0(%arg0: i32) -> (i32, i32) {
    %c0_i32 = arith.constant 0 : i32
    %c0_i32_0 = arith.constant 0 : i32
    %c0_i32_1 = arith.constant 0 : i32
    return %c0_i32, %c0_i32_0 : i32, i32
  }
  func.func @transform_1(%arg0: i32) -> (i32, i32) {
    %c0_i32 = arith.constant 0 : i32
    %c0_i32_0 = arith.constant 0 : i32
    %c0_i32_1 = arith.constant 0 : i32
    return %c0_i32, %c0_i32_0 : i32, i32
  }
  func.func @transform_2(%arg0: i32) -> (i32, i32) {
    %c0_i32 = arith.constant 0 : i32
    %c0_i32_0 = arith.constant 0 : i32
    %c0_i32_1 = arith.constant 0 : i32
    return %c0_i32, %c0_i32_0 : i32, i32
  }
  func.func @transform_3(%arg0: i32) -> (i32, i32) {
    %c0_i32 = arith.constant 0 : i32
    %c0_i32_0 = arith.constant 0 : i32
    %c0_i32_1 = arith.constant 0 : i32
    return %c0_i32, %c0_i32_0 : i32, i32
  }
  func.func @transform_4(%arg0: i32) -> (i32, i32) {
    %c0_i32 = arith.constant 0 : i32
    %c0_i32_0 = arith.constant 0 : i32
    %c0_i32_1 = arith.constant 0 : i32
    return %c0_i32, %c0_i32_0 : i32, i32
  }
  func.func @transform_5(%arg0: i32) -> (i32, i32) {
    %c0_i32 = arith.constant 0 : i32
    %c0_i32_0 = arith.constant 0 : i32
    %c0_i32_1 = arith.constant 0 : i32
    return %c0_i32, %c0_i32_0 : i32, i32
  }
}

</mosaic_0001>

<bundles_post_ra>
// kernel: tpu_custom_call.1
= control target key start
LH: loop header
LB: loop body
LE: loop exit
PB: predicated region body
PF: predicated region fallthrough
CT: control target
= control target key end

     0   :  { %10 = vsyncpa [#allocation3], 0  ;;  %s1885_s0 = inlined_call_operand.hbm [shape: s32[16,256], index: 0, kind: input, shape index: {}]   ;;  %s1886_s1 = inlined_call_operand.hbm [shape: f32[256,256], index: 1, kind: input, shape index: {}]   ;;  %s1887_s2 = inlined_call_operand.hbm [shape: f32[64,256], index: 2, kind: input, shape index: {}]   ;;  %s1888_s3 = inlined_call_operand.hbm [shape: f32[64,128], index: 3, kind: input, shape index: {}]   ;;  %s1889_s4 = inlined_call_operand.vmem [shape: f32[1,128], index: 4, kind: input, shape index: {}]   ;;  %s1890_s5 = inlined_call_operand.hbm [shape: f32[16,128], index: 5, kind: output, shape index: {}]  }
   0x1   :  { %11 = vsyncpa [#allocation6], 0 }
   0x2   :  { %12 = vsyncpa [#allocation9], 0 }
   0x3   :  { %13 = vsyncpa [#allocation4], 0  ;;  %s1557_s18 = smov [#allocation5]   ;;  %s1558_s20 = smov [#allocation2]  }
   0x4   :  { %s31_s19 = sshll.u32 %s1557_s18, 4  ;;  %s19_s21 = sshll.u32 %s1558_s20, 4  ;;  %s32_s19 = int_to_ptr.vmem [resolvable:$true] %s31_s19  ;;  %s20_s21 = int_to_ptr.vmem [resolvable:$true] %s19_s21 }
   0x5   :  { %s1457_s22 = scalar_lea.vmem %s32_s19, 8192  ;;  %p1462_p1 = scmp.lt.s32.totalorder %s32_s19, %s32_s19 }
   0x6   :  { %p1458_p0 = scmp.ne.s32.totalorder %s32_s19, %s1457_s22  ;;  %p1463_p2 = scmp.lt.s32.totalorder %s1457_s22, %s1457_s22 }
   0x8   :  { %p1464_p3 = por %p1463_p2, %p1462_p1 }
   0xa   :  { %p1465_p4 = pnand %p1464_p3, %p1458_p0 }
   0xc   :  { %1468 = shalt.err (!%p1465_p4)
}
   0xd   :  { %s1559_s23 = smov 256   ;;  %s1560_s24 = smov 16  }
   0xe   :  { %37 = dma.hbm_to_vmem [thread:$0]  %s1886_s1, 8192, %s32_s19, [#allocation6], %s1559_s23, %s1559_s23, %s1560_s24  }
   0xf   :  { %s1477_s27 = scalar_lea.vmem %s20_s21, 512  ;;  %p1482_p6 = scmp.lt.s32.totalorder %s20_s21, %s20_s21 }
  0x10   :  { %p1478_p5 = scmp.ne.s32.totalorder %s20_s21, %s1477_s27  ;;  %p1483_p7 = scmp.lt.s32.totalorder %s1477_s27, %s1477_s27 }
  0x12   :  { %p1484_p8 = por %p1483_p7, %p1482_p6 }
  0x14   :  { %p1485_p9 = pnand %p1484_p8, %p1478_p5 }
  0x16   :  { %1488 = shalt.err (!%p1485_p9)
}
  0x17   :  { %25 = dma.hbm_to_vmem [thread:$0]  %s1885_s0, 512, %s20_s21, [#allocation3], %s1559_s23, %s1559_s23, %s1560_s24  }
  0x18   :  { %s1561_s30 = smov [#allocation7]   ;;  %s1562_s7 = smov [#allocation8]  }
  0x19   :  { %s43_s6 = sshll.u32 %s1561_s30, 4  ;;  %s55_s8 = sshll.u32 %s1562_s7, 4  ;;  %s44_s6 = int_to_ptr.vmem [resolvable:$true] %s43_s6  ;;  %s56_s8 = int_to_ptr.vmem [resolvable:$true] %s55_s8 }
  0x1a   :  { %s1497_s9 = scalar_lea.vmem %s44_s6, 2048  ;;  %p1502_p11 = scmp.lt.s32.totalorder %s44_s6, %s44_s6 }
  0x1b   :  { %p1498_p10 = scmp.ne.s32.totalorder %s44_s6, %s1497_s9  ;;  %p1503_p12 = scmp.lt.s32.totalorder %s1497_s9, %s1497_s9 }
  0x1d   :  { %p1504_p13 = por %p1503_p12, %p1502_p11 }
  0x1f   :  { %p1505_p0 = pnand %p1504_p13, %p1498_p10 }
  0x21   :  { %1508 = shalt.err (!%p1505_p0)
}
  0x22   :  { %49 = dma.hbm_to_vmem [thread:$0]  %s1887_s2, 2048, %s44_s6, [#allocation6], %s1559_s23, %s1559_s23, %s1560_s24  }
  0x23   :  { %s1517_s11 = scalar_lea.vmem %s56_s8, 1024  ;;  %p1522_p2 = scmp.lt.s32.totalorder %s56_s8, %s56_s8 }
  0x24   :  { %p1518_p1 = scmp.ne.s32.totalorder %s56_s8, %s1517_s11  ;;  %p1523_p3 = scmp.lt.s32.totalorder %s1517_s11, %s1517_s11 }
  0x26   :  { %p1524_p4 = por %p1523_p3, %p1522_p2 }
  0x28   :  { %p1525_p5 = pnand %p1524_p4, %p1518_p1 }
  0x2a   :  { %1528 = shalt.err (!%p1525_p5)
}
  0x2b   :  { %s1563_s0 = smov 128   ;;  %s1564_s12 = smov 8  }
  0x2c   :  { %61 = dma.hbm_to_vmem [thread:$0]  %s1888_s3, 1024, %s56_s8, [#allocation9], %s1563_s0, %s1563_s0, %s1564_s12  }
  0x2d   :  { %1549 = dma.done.wait [#allocation3], 512  }
  0x2e   :  { %1550 = vsyncadd [#allocation3], 4294966784 }
  0x2f   :  { %1551 = dma.done.wait [#allocation6], 10240  }
  0x30   :  { %1552 = vsyncadd [#allocation6], 4294957056 }
  0x31   :  { %1553 = dma.done.wait [#allocation9], 1024  }
  0x32   :  { %1554 = vsyncadd [#allocation9], 4294966272  ;;  %v1565_v0 = vmov 0.0   ;;  %v126_v1 = vld [vmem:[#allocation5 + $0xf8] sm:$0xff]  ;;  %v125_v2 = vld [vmem:[#allocation5 + $0xf0] sm:$0xff]  ;;  %v80_v27 = vlaneseq  ;;  %v1566_v57 = vmov 1.0  }
  0x33   :  { %320 = vmatprep.mubr.f32.mxu1 %v1565_v0  ;;  %v124_v3 = vld [vmem:[#allocation5 + $0xe8] sm:$0xff]  ;;  %159 = vmatprep.subr.mxu0 %v126_v1  ;;  %v123_v4 = vld [vmem:[#allocation5 + $0xe0] sm:$0xff]  ;;  %v122_v5 = vld [vmem:[#allocation5 + $0xd8] sm:$0xff]  ;;  %s1567_s2 = smov 64   ;;  %vm252_vm2 = vcmask 523264   ;;  %vm1152_vm6 = vcmask 1041408  }
  0x34   :  { %160 = vmatpush1.msra.mxu0 %v125_v2  ;;  %v121_v6 = vld [vmem:[#allocation5 + $0xd0] sm:$0xff]  ;;  %v120_v7 = vld [vmem:[#allocation5 + $0xc8] sm:$0xff]  ;;  %v119_v8 = vld [vmem:[#allocation5 + $0xc0] sm:$0xff]  ;;  %v1642_v37 = vand.u32 127, %v80_v27  ;;  %vm1154_vm7 = vcmask 1043456   ;;  %vm1156_vm8 = vcmask 1045504  }
  0x35   :  { %161 = vmatprep.subr.mxu0 %v124_v3  ;;  %v118_v9 = vld [vmem:[#allocation5 + $0xb8] sm:$0xff]  ;;  %v117_v10 = vld [vmem:[#allocation5 + $0xb0] sm:$0xff]  ;;  %v116_v11 = vld [vmem:[#allocation5 + $0xa8] sm:$0xff]  ;;  %s1568_s16 = smov [#allocation10]  }
  0x36   :  { %162 = vmatpush1.msra.mxu0 %v123_v4  ;;  %v115_v12 = vld [vmem:[#allocation5 + $0xa0] sm:$0xff]  ;;  %v114_v13 = vld [vmem:[#allocation5 + $0x98] sm:$0xff]  ;;  %v113_v14 = vld [vmem:[#allocation5 + $0x90] sm:$0xff]  ;;  %v1657_v46 = vadd.s32 128, %v1642_v37  ;;  %vm1113_vm5 = vcmp.lt.s32.totalorder %v1642_v37, 32  ;;  %s1264_s17 = sshll.u32 %s1568_s16, 4  ;;  %s1265_s17 = int_to_ptr.vmem [resolvable:$true] %s1264_s17 }
  0x37   :  { %163 = vmatprep.subr.mxu0 %v122_v5  ;;  %v112_v15 = vld [vmem:[#allocation5 + $0x88] sm:$0xff]  ;;  %v111_v16 = vld [vmem:[#allocation5 + $0x80] sm:$0xff]  ;;  %v110_v17 = vld [vmem:[#allocation5 + $0x78] sm:$0xff]  ;;  %s1529_s18 = scalar_lea.vmem %s1265_s17, 256  ;;  %p1534_p7 = scmp.lt.s32.totalorder %s1265_s17, %s1265_s17 }
  0x38   :  { %164 = vmatpush1.msra.mxu0 %v121_v6  ;;  %v109_v18 = vld [vmem:[#allocation5 + $0x70] sm:$0xff]  ;;  %v1615_v19 = vld [vmem:[#allocation7 + $0x78] sm:$0xff]  ;;  %v108_v20 = vld [vmem:[#allocation5 + $0x68] sm:$0xff]  ;;  %p1530_p6 = scmp.ne.s32.totalorder %s1265_s17, %s1529_s18  ;;  %p1535_p8 = scmp.lt.s32.totalorder %s1529_s18, %s1529_s18 }
  0x39   :  { %165 = vmatprep.subr.mxu0 %v120_v7  ;;  %272 = vmatprep.subr.mxu1 %v1615_v19  ;;  %v1618_v21 = vld [vmem:[#allocation7 + $0x70] sm:$0xff]  ;;  %v107_v22 = vld [vmem:[#allocation5 + $0x60] sm:$0xff]  ;;  %v1621_v23 = vld [vmem:[#allocation7 + $0x68] sm:$0xff] }
  0x3a   :  { %166 = vmatpush1.msra.mxu0 %v119_v8  ;;  %273 = vmatpush1.msra.mxu1 %v1618_v21  ;;  %v1623_v24 = vld [vmem:[#allocation7 + $0x60] sm:$0xff]  ;;  %v106_v25 = vld [vmem:[#allocation5 + $0x58] sm:$0xff]  ;;  %v105_v28 = vld [vmem:[#allocation5 + $0x50] sm:$0xff]  ;;  %p1536_p9 = por %p1535_p8, %p1534_p7 }
  0x3b   :  { %167 = vmatprep.subr.mxu0 %v118_v9  ;;  %274 = vmatprep.subr.mxu1 %v1621_v23  ;;  %v1626_v26 = vld [vmem:[#allocation7 + $0x58] sm:$0xff]  ;;  %v1629_v29 = vld [vmem:[#allocation7 + $0x50] sm:$0xff]  ;;  %v1631_v30 = vld [vmem:[#allocation7 + $0x48] sm:$0xff] }
  0x3c   :  { %168 = vmatpush1.msra.mxu0 %v117_v10  ;;  %275 = vmatpush1.msra.mxu1 %v1623_v24  ;;  %v104_v31 = vld [vmem:[#allocation5 + $0x48] sm:$0xff]  ;;  %v1634_v32 = vld [vmem:[#allocation7 + $0x40] sm:$0xff]  ;;  %v1637_v34 = vld [vmem:[#allocation7 + $0x38] sm:$0xff]  ;;  %p1537_p10 = pnand %p1536_p9, %p1530_p6 }
  0x3d   :  { %169 = vmatprep.subr.mxu0 %v116_v11  ;;  %276 = vmatprep.subr.mxu1 %v1626_v26  ;;  %v103_v33 = vld [vmem:[#allocation5 + $0x40] sm:$0xff]  ;;  %v102_v35 = vld [vmem:[#allocation5 + $0x38] sm:$0xff]  ;;  %v1640_v36 = vld [vmem:[#allocation7 + $0x30] sm:$0xff] }
  0x3e   :  { %170 = vmatpush1.msra.mxu0 %v115_v12  ;;  %277 = vmatpush1.msra.mxu1 %v1629_v29  ;;  %v101_v38 = vld [vmem:[#allocation5 + $0x30] sm:$0xff]  ;;  %v1645_v39 = vld [vmem:[#allocation7 + $0x28] sm:$0xff]  ;;  %v1648_v41 = vld [vmem:[#allocation7 + $0x20] sm:$0xff] }
  0x3f   :  { %171 = vmatprep.subr.mxu0 %v114_v13  ;;  %278 = vmatprep.subr.mxu1 %v1631_v30  ;;  %v100_v40 = vld [vmem:[#allocation5 + $0x28] sm:$0xff]  ;;  %v99_v42 = vld [vmem:[#allocation5 + $0x20] sm:$0xff]  ;;  %v1651_v43 = vld [vmem:[#allocation7 + $0x18] sm:$0xff] }
  0x40   :  { %172 = vmatpush1.msra.mxu0 %v113_v14  ;;  %279 = vmatpush1.msra.mxu1 %v1634_v32  ;;  %v98_v44 = vld [vmem:[#allocation5 + $0x18] sm:$0xff]  ;;  %v1654_v45 = vld [vmem:[#allocation7 + $0x10] sm:$0xff]  ;;  %v1660_v48 = vld [vmem:[#allocation7 + $0x8] sm:$0xff] }
  0x41   :  { %173 = vmatprep.subr.mxu0 %v112_v15  ;;  %280 = vmatprep.subr.mxu1 %v1637_v34  ;;  %v97_v47 = vld [vmem:[#allocation5 + $0x10] sm:$0xff]  ;;  %v77_v49 = vld [vmem:[#allocation2 + $0x8] sm:$0xff]  ;;  %v1663_v51 = vld [vmem:[#allocation7] sm:$0xff] }
  0x42   :  { %174 = vmatpush1.msra.mxu0 %v111_v16  ;;  %281 = vmatpush1.msra.mxu1 %v1640_v36  ;;  %v96_v50 = vld [vmem:[#allocation5 + $0x8] sm:$0xff]  ;;  %v95_v52 = vld [vmem:[#allocation5] sm:$0xff]  ;;  %v158_v53 = vld [vmem:[#allocation5 + $0x1f8] sm:$0xff]  ;;  %vm84_vm0 = vcmp.eq.s32.totalorder %v77_v49, %v1657_v46 }
  0x43   :  { %175 = vmatprep.subr.mxu0 %v110_v17  ;;  %282 = vmatprep.subr.mxu1 %v1645_v39  ;;  %v157_v54 = vld [vmem:[#allocation5 + $0x1f0] sm:$0xff]  ;;  %v156_v55 = vld [vmem:[#allocation5 + $0x1e8] sm:$0xff]  ;;  %v155_v56 = vld [vmem:[#allocation5 + $0x1e0] sm:$0xff] }
  0x44   :  { %176 = vmatpush1.msra.mxu0 %v109_v18  ;;  %283 = vmatpush1.msra.mxu1 %v1648_v41  ;;  %v154_v58 = vld [vmem:[#allocation5 + $0x1d8] sm:$0xff]  ;;  %v153_v59 = vld [vmem:[#allocation5 + $0x1d0] sm:$0xff]  ;;  %v152_v60 = vld [vmem:[#allocation5 + $0x1c8] sm:$0xff] }
  0x45   :  { %177 = vmatprep.subr.mxu0 %v108_v20  ;;  %284 = vmatprep.subr.mxu1 %v1651_v43  ;;  %v151_v61 = vld [vmem:[#allocation5 + $0x1c0] sm:$0xff]  ;;  %v150_v62 = vld [vmem:[#allocation5 + $0x1b8] sm:$0xff]  ;;  %v149_v63 = vld [vmem:[#allocation5 + $0x1b0] sm:$0xff] }
  0x46   :  { %178 = vmatpush1.msra.mxu0 %v107_v22  ;;  %285 = vmatpush1.msra.mxu1 %v1654_v45  ;;  %v148_v1 = vld [vmem:[#allocation5 + $0x1a8] sm:$0xff]  ;;  %v147_v2 = vld [vmem:[#allocation5 + $0x1a0] sm:$0xff]  ;;  %v146_v3 = vld [vmem:[#allocation5 + $0x198] sm:$0xff] }
  0x47   :  { %179 = vmatprep.subr.mxu0 %v106_v25  ;;  %286 = vmatprep.subr.mxu1 %v1660_v48  ;;  %v145_v4 = vld [vmem:[#allocation5 + $0x190] sm:$0xff]  ;;  %v144_v5 = vld [vmem:[#allocation5 + $0x188] sm:$0xff]  ;;  %v143_v6 = vld [vmem:[#allocation5 + $0x180] sm:$0xff] }
  0x48   :  { %180 = vmatpush1.msra.mxu0 %v105_v28  ;;  %287 = vmatpush1.msra.mxu1 %v1663_v51  ;;  %v142_v7 = vld [vmem:[#allocation5 + $0x178] sm:$0xff]  ;;  %v141_v8 = vld [vmem:[#allocation5 + $0x170] sm:$0xff]  ;;  %v140_v9 = vld [vmem:[#allocation5 + $0x168] sm:$0xff] }
  0x49   :  { %181 = vmatprep.subr.mxu0 %v104_v31  ;;  %321 = vmatmul.mubr.f32.vlgmr.msra.gmra.mxu1 %v1565_v0  ;;  %v139_v10 = vld [vmem:[#allocation5 + $0x160] sm:$0xff]  ;;  %v138_v11 = vld [vmem:[#allocation5 + $0x158] sm:$0xff]  ;;  %v137_v12 = vld [vmem:[#allocation5 + $0x150] sm:$0xff] }
  0x4a   :  { %182 = vmatpush1.msra.mxu0 %v103_v33  ;;  %1282 = vmatprep.mubr.msk.f32.mxu0 %vm84_vm0, %v1566_v57  ;;  %v136_v13 = vld [vmem:[#allocation5 + $0x148] sm:$0xff]  ;;  %v135_v14 = vld [vmem:[#allocation5 + $0x140] sm:$0xff]  ;;  %v134_v15 = vld [vmem:[#allocation5 + $0x138] sm:$0xff] }
  0x4b   :  { %183 = vmatprep.subr.mxu0 %v102_v35  ;;  %372 = vmatprep.subr.mxu1 %v1615_v19  ;;  %v133_v16 = vld [vmem:[#allocation5 + $0x130] sm:$0xff]  ;;  %v132_v17 = vld [vmem:[#allocation5 + $0x128] sm:$0xff]  ;;  %v131_v18 = vld [vmem:[#allocation5 + $0x120] sm:$0xff] }
  0x4c   :  { %184 = vmatpush1.msra.mxu0 %v101_v38  ;;  %373 = vmatpush1.msra.mxu1 %v1618_v21  ;;  %v130_v20 = vld [vmem:[#allocation5 + $0x118] sm:$0xff]  ;;  %v129_v22 = vld [vmem:[#allocation5 + $0x110] sm:$0xff]  ;;  %v76_v25 = vld [vmem:[#allocation2] sm:$0xff] }
  0x4d   :  { %185 = vmatprep.subr.mxu0 %v100_v40  ;;  %374 = vmatprep.subr.mxu1 %v1621_v23  ;;  %v128_v27 = vld [vmem:[#allocation5 + $0x108] sm:$0xff]  ;;  %v127_v28 = vld [vmem:[#allocation5 + $0x100] sm:$0xff]  ;;  %vm83_vm1 = vcmp.eq.s32.totalorder %v76_v25, %v1642_v37 }
  0x4e   :  { %186 = vmatpush1.msra.mxu0 %v99_v42  ;;  %375 = vmatpush1.msra.mxu1 %v1623_v24 }
  0x4f   :  { %187 = vmatprep.subr.mxu0 %v98_v44  ;;  %376 = vmatprep.subr.mxu1 %v1626_v26 }
  0x50   :  { %188 = vmatpush1.msra.mxu0 %v97_v47  ;;  %377 = vmatpush1.msra.mxu1 %v1629_v29 }
  0x51   :  { %189 = vmatprep.subr.mxu0 %v96_v50  ;;  %378 = vmatprep.subr.mxu1 %v1631_v30 }
  0x52   :  { %190 = vmatpush1.msra.mxu0 %v95_v52  ;;  %379 = vmatpush1.msra.mxu1 %v1634_v32 }
  0x53   :  { %191 = vmatprep.subr.mxu0 %v158_v53  ;;  %380 = vmatprep.subr.mxu1 %v1637_v34 }
  0x54   :  { %192 = vmatpush2.msra.mxu0 %v157_v54  ;;  %381 = vmatpush1.msra.mxu1 %v1640_v36 }
  0x55   :  { %193 = vmatprep.subr.mxu0 %v156_v55  ;;  %382 = vmatprep.subr.mxu1 %v1645_v39 }
  0x56   :  { %194 = vmatpush2.msra.mxu0 %v155_v56  ;;  %383 = vmatpush1.msra.mxu1 %v1648_v41 }
  0x57   :  { %195 = vmatprep.subr.mxu0 %v154_v58  ;;  %384 = vmatprep.subr.mxu1 %v1651_v43 }
  0x58   :  { %196 = vmatpush2.msra.mxu0 %v153_v59  ;;  %385 = vmatpush1.msra.mxu1 %v1654_v45 }
  0x59   :  { %197 = vmatprep.subr.mxu0 %v152_v60  ;;  %386 = vmatprep.subr.mxu1 %v1660_v48 }
  0x5a   :  { %198 = vmatpush2.msra.mxu0 %v151_v61  ;;  %387 = vmatpush1.msra.mxu1 %v1663_v51 }
  0x5b   :  { %199 = vmatprep.subr.mxu0 %v150_v62  ;;  %420 = vmatprep.mubr.f32.mxu1 %v1565_v0 }
  0x5c   :  { %200 = vmatpush2.msra.mxu0 %v149_v63  ;;  %482 = vmatprep.subr.mxu1 %v1615_v19 }
  0x5d   :  { %201 = vmatprep.subr.mxu0 %v148_v1 }
  0x5e   :  { %202 = vmatpush2.msra.mxu0 %v147_v2 }
  0x5f   :  { %203 = vmatprep.subr.mxu0 %v146_v3 }
  0x60   :  { %204 = vmatpush2.msra.mxu0 %v145_v4 }
  0x61   :  { %205 = vmatprep.subr.mxu0 %v144_v5 }
  0x62   :  { %206 = vmatpush2.msra.mxu0 %v143_v6 }
  0x63   :  { %207 = vmatprep.subr.mxu0 %v142_v7 }
  0x64   :  { %208 = vmatpush2.msra.mxu0 %v141_v8 }
  0x65   :  { %209 = vmatprep.subr.mxu0 %v140_v9 }
  0x66   :  { %210 = vmatpush2.msra.mxu0 %v139_v10 }
  0x67   :  { %211 = vmatprep.subr.mxu0 %v138_v11 }
  0x68   :  { %212 = vmatpush2.msra.mxu0 %v137_v12 }
  0x69   :  { %213 = vmatprep.subr.mxu0 %v136_v13 }
  0x6a   :  { %214 = vmatpush2.msra.mxu0 %v135_v14 }
  0x6b   :  { %215 = vmatprep.subr.mxu0 %v134_v15 }
  0x6c   :  { %216 = vmatpush2.msra.mxu0 %v133_v16 }
  0x6d   :  { %217 = vmatprep.subr.mxu0 %v132_v17 }
  0x6e   :  { %218 = vmatpush2.msra.mxu0 %v131_v18 }
  0x6f   :  { %219 = vmatprep.subr.mxu0 %v130_v20 }
  0x70   :  { %220 = vmatpush2.msra.mxu0 %v129_v22 }
  0x71   :  { %221 = vmatprep.subr.mxu0 %v128_v27 }
  0x72   :  { %222 = vmatpush2.msra.mxu0 %v127_v28 }
  0x73   :  { %1283 = vmatmul.mubr.msk.f32.vlgmr.msra.gmra.mxu0 %vm83_vm1, %v1566_v57  ;;  %702 = vmatprep.subr.mxu0 %v1615_v19 }
  0x74   :  { %703 = vmatpush1.msra.mxu0 %v1618_v21 }
  0x75   :  { %704 = vmatprep.subr.mxu0 %v1621_v23 }
  0x76   :  { %705 = vmatpush1.msra.mxu0 %v1623_v24 }
  0x77   :  { %706 = vmatprep.subr.mxu0 %v1626_v26 }
  0x78   :  { %707 = vmatpush1.msra.mxu0 %v1629_v29 }
  0x79   :  { %708 = vmatprep.subr.mxu0 %v1631_v30 }
  0x7a   :  { %709 = vmatpush1.msra.mxu0 %v1634_v32 }
  0x7b   :  { %710 = vmatprep.subr.mxu0 %v1637_v34 }
  0x7c   :  { %711 = vmatpush1.msra.mxu0 %v1640_v36 }
  0x7d   :  { %712 = vmatprep.subr.mxu0 %v1645_v39 }
  0x7e   :  { %713 = vmatpush1.msra.mxu0 %v1648_v41 }
  0x7f   :  { %714 = vmatprep.subr.mxu0 %v1651_v43 }
  0x80   :  { %715 = vmatpush1.msra.mxu0 %v1654_v45 }
  0x81   :  { %716 = vmatprep.subr.mxu0 %v1660_v48 }
  0x82   :  { %717 = vmatpush1.msra.mxu0 %v1663_v51 }
  0x83   :  { %915 = vmatprep.subr.mxu0 %v1615_v19 }
 0x109   :  { %v322_v31 = vpop.f32.mrf.mxu1 }
 0x10b   :  { %v324_v42 = vpop.f32.mrf.mxu1 }
 0x133   :  { %v1708_v33 = vpop.f32.mrf.mxu0 }
 0x134   :  { %v327_v35 = vadd.f32 %v322_v31, %v1708_v33 }
 0x135   :  { %v1711_v40 = vpop.f32.mrf.mxu0 }
 0x136   :  { %v1286_v38 = vmul.f32 -1.442695, %v327_v35  ;;  %v328_v44 = vadd.f32 %v324_v42, %v1711_v40 }
 0x138   :  { %1353 = vpow2.f32 %v1286_v38  ;;  %v1287_v54 = vmul.f32 -1.442695, %v328_v44 }
 0x139   :  { %1355 = vtanh.f32 %v328_v44 }
 0x145   :  { %v1354_v47 = vpop.eup %1353 }
 0x146   :  { %v335_v49 = vadd.f32 1.0, %v1354_v47  ;;  %v1356_v50 = vpop.eup %1355 }
 0x148   :  { %1357 = vrcp.f32 %v335_v49 }
 0x149   :  { %1359 = vpow2.f32 %v1287_v54 }
 0x155   :  { %v1358_v52 = vpop.eup %1357 }
 0x156   :  { %v343_v53 = vmul.f32 %v1358_v52, %v1356_v50  ;;  %v1360_v55 = vpop.eup %1359  ;;  %v342_v58 = vmul.f32 0.0, %v1358_v52 }
 0x157   :  { %v336_v56 = vadd.f32 1.0, %v1360_v55 }
 0x158   :  { %345 = vrot.lane.b32.xlu0 %v343_v53, %s1567_s2 }
 0x159   :  { %1361 = vrcp.f32 %v336_v56 }
 0x166   :  { %v1362_v61 = vpop.eup %1361 }
 0x1ca   :  { %v346_v59 = vpop.permute.xlu0 %345 }
 0x1cb   :  { %v348_v60 = vadd.f32 %v346_v59, %v342_v58 }
 0x1cd   :  { %1363 = vtanh.f32 %v348_v60  ;;  %v449_v12 = vrot.slane %v348_v60, 6 }
 0x1da   :  { %v1364_v62 = vpop.eup %1363 }
 0x1db   :  { %v350_v63 = vmul.f32 %v1364_v62, %v1362_v61 }
 0x1dd   :  { %352 = vrot.lane.b32.xlu0 %v350_v63, %s1567_s2 }
 0x24f   :  { %v1716_v1 = vpop.permute.xlu0 %352 }
 0x250   :  { %1288 = vmatmul.mubr.msk.f32.vlgmr.msra.gmra.mxu1 %vm252_vm2, %v1716_v1 }
 0x251   :  { %483 = vmatpush1.msra.mxu1 %v1618_v21  ;;  %530 = vmatprep.mubr.f32.mxu1 %v1565_v0 }
 0x252   :  { %484 = vmatprep.subr.mxu1 %v1621_v23 }
 0x253   :  { %485 = vmatpush1.msra.mxu1 %v1623_v24 }
 0x254   :  { %486 = vmatprep.subr.mxu1 %v1626_v26 }
 0x255   :  { %487 = vmatpush1.msra.mxu1 %v1629_v29 }
 0x256   :  { %488 = vmatprep.subr.mxu1 %v1631_v30 }
 0x257   :  { %489 = vmatpush1.msra.mxu1 %v1634_v32 }
 0x258   :  { %490 = vmatprep.subr.mxu1 %v1637_v34 }
 0x259   :  { %491 = vmatpush1.msra.mxu1 %v1640_v36 }
 0x25a   :  { %492 = vmatprep.subr.mxu1 %v1645_v39 }
 0x25b   :  { %493 = vmatpush1.msra.mxu1 %v1648_v41 }
 0x25c   :  { %494 = vmatprep.subr.mxu1 %v1651_v43 }
 0x25d   :  { %495 = vmatpush1.msra.mxu1 %v1654_v45 }
 0x25e   :  { %496 = vmatprep.subr.mxu1 %v1660_v48 }
 0x25f   :  { %497 = vmatpush1.msra.mxu1 %v1663_v51 }
 0x260   :  { %592 = vmatprep.subr.mxu1 %v1615_v19 }
 0x310   :  { %v422_v2 = vpop.f32.mrf.mxu1 }
 0x311   :  { %v429_v3 = vrot.slane %v422_v2, 6 }
 0x312   :  { %v424_v6 = vpop.f32.mrf.mxu1 }
 0x313   :  { %v433_v4 = vadd.f32 %v429_v3, %v1708_v33  ;;  %v430_v7 = vrot.slane %v424_v6, 6 }
 0x315   :  { %v1289_v5 = vmul.f32 -1.442695, %v433_v4  ;;  %v434_v8 = vadd.f32 %v430_v7, %v1711_v40 }
 0x317   :  { %1365 = vpow2.f32 %v1289_v5  ;;  %v1290_v16 = vmul.f32 -1.442695, %v434_v8 }
 0x318   :  { %1367 = vtanh.f32 %v434_v8 }
 0x324   :  { %v1366_v9 = vpop.eup %1365 }
 0x325   :  { %v441_v10 = vadd.f32 1.0, %v1366_v9  ;;  %v1368_v11 = vpop.eup %1367 }
 0x327   :  { %1369 = vrcp.f32 %v441_v10 }
 0x328   :  { %1371 = vpow2.f32 %v1290_v16 }
 0x334   :  { %v1370_v13 = vpop.eup %1369 }
 0x335   :  { %v452_v14 = vmul.f32 %v1370_v13, %v1368_v11  ;;  %v451_v15 = vmul.f32 %v1370_v13, %v449_v12  ;;  %v1372_v17 = vpop.eup %1371 }
 0x336   :  { %v442_v18 = vadd.f32 1.0, %v1372_v17 }
 0x337   :  { %454 = vrot.lane.b32.xlu1 %v452_v14, %s1567_s2 }
 0x338   :  { %1373 = vrcp.f32 %v442_v18 }
 0x345   :  { %v1374_v25 = vpop.eup %1373 }
 0x3a9   :  { %v455_v20 = vpop.permute.xlu1 %454 }
 0x3aa   :  { %v457_v22 = vadd.f32 %v455_v20, %v451_v15 }
 0x3ac   :  { %1375 = vtanh.f32 %v457_v22  ;;  %v559_v56 = vrot.slane %v457_v22, 6 }
 0x3b9   :  { %v1376_v27 = vpop.eup %1375 }
 0x3ba   :  { %v459_v28 = vmul.f32 %v1376_v27, %v1374_v25 }
 0x3bc   :  { %v461_v31 = vrot.slane %v459_v28, 2  ;;  %v78_v28 = vld [vmem:[#allocation2 + $0x10] sm:$0xff] }
 0x3bd   :  { %vm85_vm4 = vcmp.eq.s32.totalorder %v78_v28, %v1642_v37 }
 0x3be   :  { %462 = vrot.lane.b32.xlu1 %v461_v31, %s1567_s2 }
 0x430   :  { %v1741_v35 = vpop.permute.xlu1 %462 }
 0x431   :  { %1291 = vmatmul.mubr.msk.f32.vlgmr.msra.gmra.mxu1 %vm252_vm2, %v1741_v35 }
 0x432   :  { %593 = vmatpush1.msra.mxu1 %v1618_v21  ;;  %640 = vmatprep.mubr.f32.mxu1 %v1565_v0 }
 0x433   :  { %594 = vmatprep.subr.mxu1 %v1621_v23 }
 0x434   :  { %595 = vmatpush1.msra.mxu1 %v1623_v24 }
 0x435   :  { %596 = vmatprep.subr.mxu1 %v1626_v26 }
 0x436   :  { %597 = vmatpush1.msra.mxu1 %v1629_v29 }
 0x437   :  { %598 = vmatprep.subr.mxu1 %v1631_v30 }
 0x438   :  { %599 = vmatpush1.msra.mxu1 %v1634_v32 }
 0x439   :  { %600 = vmatprep.subr.mxu1 %v1637_v34 }
 0x43a   :  { %601 = vmatpush1.msra.mxu1 %v1640_v36 }
 0x43b   :  { %602 = vmatprep.subr.mxu1 %v1645_v39 }
 0x43c   :  { %603 = vmatpush1.msra.mxu1 %v1648_v41 }
 0x43d   :  { %604 = vmatprep.subr.mxu1 %v1651_v43 }
 0x43e   :  { %605 = vmatpush1.msra.mxu1 %v1654_v45 }
 0x43f   :  { %606 = vmatprep.subr.mxu1 %v1660_v48 }
 0x440   :  { %607 = vmatpush1.msra.mxu1 %v1663_v51 }
 0x441   :  { %805 = vmatprep.subr.mxu1 %v1615_v19 }
 0x4f1   :  { %v532_v38 = vpop.f32.mrf.mxu1 }
 0x4f2   :  { %v539_v42 = vrot.slane %v532_v38, 4 }
 0x4f3   :  { %v534_v49 = vpop.f32.mrf.mxu1 }
 0x4f4   :  { %v543_v44 = vadd.f32 %v539_v42, %v1708_v33  ;;  %v540_v50 = vrot.slane %v534_v49, 4 }
 0x4f6   :  { %v1292_v47 = vmul.f32 -1.442695, %v543_v44  ;;  %v544_v52 = vadd.f32 %v540_v50, %v1711_v40 }
 0x4f8   :  { %1377 = vpow2.f32 %v1292_v47  ;;  %v1293_v61 = vmul.f32 -1.442695, %v544_v52 }
 0x4f9   :  { %1379 = vtanh.f32 %v544_v52 }
 0x505   :  { %v1378_v53 = vpop.eup %1377 }
 0x506   :  { %v551_v54 = vadd.f32 1.0, %v1378_v53  ;;  %v1380_v55 = vpop.eup %1379 }
 0x508   :  { %1381 = vrcp.f32 %v551_v54 }
 0x509   :  { %1383 = vpow2.f32 %v1293_v61 }
 0x515   :  { %v1382_v58 = vpop.eup %1381 }
 0x516   :  { %v562_v59 = vmul.f32 %v1382_v58, %v1380_v55  ;;  %v561_v60 = vmul.f32 %v1382_v58, %v559_v56  ;;  %v1384_v62 = vpop.eup %1383 }
 0x517   :  { %v552_v63 = vadd.f32 1.0, %v1384_v62 }
 0x518   :  { %564 = vrot.lane.b32.xlu0 %v562_v59, %s1567_s2 }
 0x519   :  { %1385 = vrcp.f32 %v552_v63 }
 0x526   :  { %v1386_v4 = vpop.eup %1385 }
 0x58a   :  { %v565_v2 = vpop.permute.xlu0 %564 }
 0x58b   :  { %v567_v3 = vadd.f32 %v565_v2, %v561_v60 }
 0x58d   :  { %1387 = vtanh.f32 %v567_v3  ;;  %v669_v20 = vrot.slane %v567_v3, 6 }
 0x59a   :  { %v1388_v5 = vpop.eup %1387 }
 0x59b   :  { %v569_v6 = vmul.f32 %v1388_v5, %v1386_v4 }
 0x59d   :  { %v571_v7 = vrot.slane %v569_v6, 4 }
 0x59f   :  { %572 = vrot.lane.b32.xlu1 %v571_v7, %s1567_s2 }
 0x611   :  { %v1766_v8 = vpop.permute.xlu1 %572 }
 0x612   :  { %1294 = vmatmul.mubr.msk.f32.vlgmr.msra.gmra.mxu1 %vm252_vm2, %v1766_v8 }
 0x613   :  { %806 = vmatpush1.msra.mxu1 %v1618_v21  ;;  %853 = vmatprep.mubr.f32.mxu1 %v1565_v0 }
 0x614   :  { %807 = vmatprep.subr.mxu1 %v1621_v23 }
 0x615   :  { %808 = vmatpush1.msra.mxu1 %v1623_v24 }
 0x616   :  { %809 = vmatprep.subr.mxu1 %v1626_v26 }
 0x617   :  { %810 = vmatpush1.msra.mxu1 %v1629_v29 }
 0x618   :  { %811 = vmatprep.subr.mxu1 %v1631_v30 }
 0x619   :  { %812 = vmatpush1.msra.mxu1 %v1634_v32 }
 0x61a   :  { %813 = vmatprep.subr.mxu1 %v1637_v34 }
 0x61b   :  { %814 = vmatpush1.msra.mxu1 %v1640_v36 }
 0x61c   :  { %815 = vmatprep.subr.mxu1 %v1645_v39 }
 0x61d   :  { %816 = vmatpush1.msra.mxu1 %v1648_v41 }
 0x61e   :  { %817 = vmatprep.subr.mxu1 %v1651_v43 }
 0x61f   :  { %818 = vmatpush1.msra.mxu1 %v1654_v45 }
 0x620   :  { %819 = vmatprep.subr.mxu1 %v1660_v48 }
 0x621   :  { %820 = vmatpush1.msra.mxu1 %v1663_v51 }
 0x622   :  { %1025 = vmatprep.subr.mxu1 %v1615_v19  ;;  %v79_v19 = vld [vmem:[#allocation2 + $0x18] sm:$0xff] }
 0x623   :  { %vm86_vm3 = vcmp.eq.s32.totalorder %v79_v19, %v1657_v46 }
 0x624   :  { %1284 = vmatprep.mubr.msk.f32.mxu0 %vm86_vm3, %v1566_v57 }
 0x625   :  { %1285 = vmatmul.mubr.msk.f32.gmra.mxu0 %vm85_vm4, %v1566_v57 }
 0x626   :  { %750 = vmatprep.mubr.f32.mxu0 %v1565_v0 }
 0x6d2   :  { %v642_v9 = vpop.f32.mrf.mxu1 }
 0x6d3   :  { %v649_v10 = vrot.slane %v642_v9, 2 }
 0x6d4   :  { %v644_v13 = vpop.f32.mrf.mxu1 }
 0x6d5   :  { %v653_v11 = vadd.f32 %v649_v10, %v1708_v33  ;;  %v650_v14 = vrot.slane %v644_v13, 2 }
 0x6d7   :  { %v1295_v12 = vmul.f32 -1.442695, %v653_v11  ;;  %v654_v15 = vadd.f32 %v650_v14, %v1711_v40 }
 0x6d9   :  { %1389 = vpow2.f32 %v1295_v12  ;;  %v1296_v33 = vmul.f32 -1.442695, %v654_v15 }
 0x6da   :  { %1391 = vtanh.f32 %v654_v15 }
 0x6e5   :  { %v1816_v57 = vpop.f32.mrf.mxu0 }
 0x6e6   :  { %v1390_v16 = vpop.eup %1389 }
 0x6e7   :  { %v661_v17 = vadd.f32 1.0, %v1390_v16  ;;  %v1392_v18 = vpop.eup %1391  ;;  %v1818_v52 = vpop.f32.mrf.mxu0 }
 0x6e9   :  { %1393 = vrcp.f32 %v661_v17 }
 0x6ea   :  { %1395 = vpow2.f32 %v1296_v33 }
 0x6f6   :  { %v1394_v22 = vpop.eup %1393 }
 0x6f7   :  { %v672_v25 = vmul.f32 %v1394_v22, %v1392_v18  ;;  %v671_v27 = vmul.f32 %v1394_v22, %v669_v20  ;;  %v1396_v40 = vpop.eup %1395 }
 0x6f8   :  { %v662_v31 = vadd.f32 1.0, %v1396_v40 }
 0x6f9   :  { %674 = vrot.lane.b32.xlu0 %v672_v25, %s1567_s2 }
 0x6fa   :  { %1397 = vrcp.f32 %v662_v31 }
 0x707   :  { %v1398_v44 = vpop.eup %1397 }
 0x76b   :  { %v675_v38 = vpop.permute.xlu0 %674 }
 0x76c   :  { %v677_v42 = vadd.f32 %v675_v38, %v671_v27 }
 0x76e   :  { %1399 = vtanh.f32 %v677_v42  ;;  %v773_v62 = vrot.slane %v677_v42, 6 }
 0x77b   :  { %v1400_v47 = vpop.eup %1399 }
 0x77c   :  { %v679_v49 = vmul.f32 %v1400_v47, %v1398_v44 }
 0x77e   :  { %v681_v46 = vrot.slane %v679_v49, 6 }
 0x780   :  { %682 = vrot.lane.b32.xlu1 %v681_v46, %s1567_s2 }
 0x7f2   :  { %v1796_v50 = vpop.permute.xlu1 %682 }
 0x7f3   :  { %1297 = vmatmul.mubr.msk.f32.vlgmr.msra.gmra.mxu0 %vm252_vm2, %v1796_v50 }
 0x7f4   :  { %916 = vmatpush1.msra.mxu0 %v1618_v21  ;;  %963 = vmatprep.mubr.f32.mxu0 %v1565_v0 }
 0x7f5   :  { %917 = vmatprep.subr.mxu0 %v1621_v23 }
 0x7f6   :  { %918 = vmatpush1.msra.mxu0 %v1623_v24 }
 0x7f7   :  { %919 = vmatprep.subr.mxu0 %v1626_v26 }
 0x7f8   :  { %920 = vmatpush1.msra.mxu0 %v1629_v29 }
 0x7f9   :  { %921 = vmatprep.subr.mxu0 %v1631_v30 }
 0x7fa   :  { %922 = vmatpush1.msra.mxu0 %v1634_v32 }
 0x7fb   :  { %923 = vmatprep.subr.mxu0 %v1637_v34 }
 0x7fc   :  { %924 = vmatpush1.msra.mxu0 %v1640_v36 }
 0x7fd   :  { %925 = vmatprep.subr.mxu0 %v1645_v39 }
 0x7fe   :  { %926 = vmatpush1.msra.mxu0 %v1648_v41 }
 0x7ff   :  { %927 = vmatprep.subr.mxu0 %v1651_v43 }
 0x800   :  { %928 = vmatpush1.msra.mxu0 %v1654_v45 }
 0x801   :  { %929 = vmatprep.subr.mxu0 %v1660_v48 }
 0x802   :  { %930 = vmatpush1.msra.mxu0 %v1663_v51 }
 0x8b3   :  { %v752_v53 = vpop.f32.mrf.mxu0 }
 0x8b4   :  { %v757_v54 = vadd.f32 %v752_v53, %v1816_v57 }
 0x8b5   :  { %v754_v56 = vpop.f32.mrf.mxu0 }
 0x8b6   :  { %v1298_v55 = vmul.f32 -1.442695, %v757_v54  ;;  %v758_v58 = vadd.f32 %v754_v56, %v1818_v52 }
 0x8b8   :  { %1401 = vpow2.f32 %v1298_v55  ;;  %v1299_v4 = vmul.f32 -1.442695, %v758_v58 }
 0x8b9   :  { %1403 = vtanh.f32 %v758_v58 }
 0x8c5   :  { %v1402_v59 = vpop.eup %1401 }
 0x8c6   :  { %v765_v60 = vadd.f32 1.0, %v1402_v59  ;;  %v1404_v61 = vpop.eup %1403 }
 0x8c8   :  { %1405 = vrcp.f32 %v765_v60 }
 0x8c9   :  { %1407 = vpow2.f32 %v1299_v4 }
 0x8d5   :  { %v1406_v63 = vpop.eup %1405 }
 0x8d6   :  { %v776_v2 = vmul.f32 %v1406_v63, %v1404_v61  ;;  %v775_v3 = vmul.f32 %v1406_v63, %v773_v62  ;;  %v1408_v5 = vpop.eup %1407 }
 0x8d7   :  { %v766_v6 = vadd.f32 1.0, %v1408_v5 }
 0x8d8   :  { %778 = vrot.lane.b32.xlu0 %v776_v2, %s1567_s2 }
 0x8d9   :  { %1409 = vrcp.f32 %v766_v6 }
 0x8e6   :  { %v1410_v10 = vpop.eup %1409 }
 0x94a   :  { %v779_v7 = vpop.permute.xlu0 %778 }
 0x94b   :  { %v781_v9 = vadd.f32 %v779_v7, %v775_v3 }
 0x94d   :  { %1411 = vtanh.f32 %v781_v9 }
 0x95a   :  { %v1412_v11 = vpop.eup %1411 }
 0x95b   :  { %v783_v12 = vmul.f32 %v1412_v11, %v1410_v10 }
 0x95d   :  { %785 = vrot.lane.b32.xlu1 %v783_v12, %s1567_s2 }
 0x9cf   :  { %v1824_v13 = vpop.permute.xlu1 %785 }
 0x9d0   :  { %1300 = vmatmul.mubr.msk.f32.vlgmr.msra.gmra.mxu1 %vm252_vm2, %v1824_v13 }
 0x9d1   :  { %1026 = vmatpush1.msra.mxu1 %v1618_v21  ;;  %1073 = vmatprep.mubr.f32.mxu1 %v1565_v0 }
 0x9d2   :  { %1027 = vmatprep.subr.mxu1 %v1621_v23 }
 0x9d3   :  { %1028 = vmatpush1.msra.mxu1 %v1623_v24 }
 0x9d4   :  { %1029 = vmatprep.subr.mxu1 %v1626_v26 }
 0x9d5   :  { %1030 = vmatpush1.msra.mxu1 %v1629_v29 }
 0x9d6   :  { %1031 = vmatprep.subr.mxu1 %v1631_v30 }
 0x9d7   :  { %1032 = vmatpush1.msra.mxu1 %v1634_v32 }
 0x9d8   :  { %1033 = vmatprep.subr.mxu1 %v1637_v34 }
 0x9d9   :  { %1034 = vmatpush1.msra.mxu1 %v1640_v36 }
 0x9da   :  { %1035 = vmatprep.subr.mxu1 %v1645_v39  ;;  %v882_v39 = vrot.slane %v781_v9, 6 }
 0x9db   :  { %1036 = vmatpush1.msra.mxu1 %v1648_v41 }
 0x9dc   :  { %1037 = vmatprep.subr.mxu1 %v1651_v43 }
 0x9dd   :  { %1038 = vmatpush1.msra.mxu1 %v1654_v45 }
 0x9de   :  { %1039 = vmatprep.subr.mxu1 %v1660_v48 }
 0x9df   :  { %1040 = vmatpush1.msra.mxu1 %v1663_v51 }
 0xa90   :  { %v855_v0 = vpop.f32.mrf.mxu1 }
 0xa91   :  { %v862_v21 = vrot.slane %v855_v0, 6 }
 0xa92   :  { %v857_v26 = vpop.f32.mrf.mxu1 }
 0xa93   :  { %v866_v23 = vadd.f32 %v862_v21, %v1816_v57  ;;  %v863_v29 = vrot.slane %v857_v26, 6 }
 0xa95   :  { %v1301_v24 = vmul.f32 -1.442695, %v866_v23  ;;  %v867_v30 = vadd.f32 %v863_v29, %v1818_v52 }
 0xa97   :  { %1413 = vpow2.f32 %v1301_v24  ;;  %v1302_v48 = vmul.f32 -1.442695, %v867_v30 }
 0xa98   :  { %1415 = vtanh.f32 %v867_v30  ;;  %v1168_v30 = vld [vmem:[#allocation8 + $0x38] sm:$0xff] }
 0xa99   :  { %1322 = vmatprep.subr.mxu0 %v1168_v30 }
 0xaa4   :  { %v1414_v32 = vpop.eup %1413 }
 0xaa5   :  { %v874_v34 = vadd.f32 1.0, %v1414_v32  ;;  %v1416_v36 = vpop.eup %1415  ;;  %v1167_v32 = vld [vmem:[#allocation8 + $0x30] sm:$0xff] }
 0xaa7   :  { %1417 = vrcp.f32 %v874_v34  ;;  %v1165_v34 = vld [vmem:[#allocation8 + $0x20] sm:$0xff] }
 0xaa8   :  { %1419 = vpow2.f32 %v1302_v48 }
 0xab4   :  { %v1418_v41 = vpop.eup %1417 }
 0xab5   :  { %v885_v43 = vmul.f32 %v1418_v41, %v1416_v36  ;;  %v884_v45 = vmul.f32 %v1418_v41, %v882_v39  ;;  %v1420_v51 = vpop.eup %1419  ;;  %v1163_v36 = vld [vmem:[#allocation8 + $0x10] sm:$0xff] }
 0xab6   :  { %v875_v14 = vadd.f32 1.0, %v1420_v51  ;;  %v1162_v51 = vld [vmem:[#allocation8 + $0x8] sm:$0xff] }
 0xab7   :  { %887 = vrot.lane.b32.xlu0 %v885_v43, %s1567_s2 }
 0xab8   :  { %1421 = vrcp.f32 %v875_v14  ;;  %v1161_v14 = vld [vmem:[#allocation8] sm:$0xff] }
 0xac5   :  { %v1422_v17 = vpop.eup %1421 }
 0xb29   :  { %v888_v15 = vpop.permute.xlu0 %887 }
 0xb2a   :  { %v890_v16 = vadd.f32 %v888_v15, %v884_v45 }
 0xb2c   :  { %1423 = vtanh.f32 %v890_v16  ;;  %v992_v49 = vrot.slane %v890_v16, 6 }
 0xb39   :  { %v1424_v18 = vpop.eup %1423 }
 0xb3a   :  { %v892_v20 = vmul.f32 %v1424_v18, %v1422_v17 }
 0xb3c   :  { %v894_v22 = vrot.slane %v892_v20, 2 }
 0xb3e   :  { %895 = vrot.lane.b32.xlu1 %v894_v22, %s1567_s2 }
 0xbb0   :  { %v1848_v25 = vpop.permute.xlu1 %895 }
 0xbb1   :  { %1303 = vmatmul.mubr.msk.f32.vlgmr.msra.gmra.mxu0 %vm252_vm2, %v1848_v25  ;;  %v1131_v20 = vsel %vm1113_vm5, %v1848_v25, %v1766_v8 }
 0xbb2   :  { %1323 = vmatpush3.msra.mxu0 %v1168_v30 }
 0xbb3   :  { %1324 = vmatprep.subr.mxu0 %v1167_v32 }
 0xbb4   :  { %1325 = vmatpush3.msra.mxu0 %v1167_v32 }
 0xc71   :  { %v965_v27 = vpop.f32.mrf.mxu0 }
 0xc72   :  { %v972_v19 = vrot.slane %v965_v27, 4 }
 0xc73   :  { %v967_v40 = vpop.f32.mrf.mxu0 }
 0xc74   :  { %v976_v28 = vadd.f32 %v972_v19, %v1816_v57  ;;  %v973_v31 = vrot.slane %v967_v40, 4  ;;  %v1126_v19 = vsel %vm1113_vm5, %v1766_v8, %v1848_v25 }
 0xc76   :  { %v1304_v33 = vmul.f32 -1.442695, %v976_v28  ;;  %v977_v38 = vadd.f32 %v973_v31, %v1818_v52  ;;  %v1144_v28 = vrot.slane %v1131_v20, 6  ;;  %v1130_v31 = vsel %vm1113_vm5, %v1824_v13, %v1796_v50 }
 0xc78   :  { %1425 = vpow2.f32 %v1304_v33  ;;  %v1305_v55 = vmul.f32 -1.442695, %v977_v38  ;;  %v1129_v33 = vsel %vm1113_vm5, %v1796_v50, %v1824_v13  ;;  %v1309_v50 = vld [vmem:[%s1889_s4] ss:$0 sm:$0xff] }
 0xc79   :  { %1427 = vtanh.f32 %v977_v38 }
 0xc85   :  { %v1426_v42 = vpop.eup %1425 }
 0xc86   :  { %v984_v44 = vadd.f32 1.0, %v1426_v42  ;;  %v1428_v47 = vpop.eup %1427  ;;  %v1138_v42 = vrot.slane %v1126_v19, 4 }
 0xc88   :  { %1429 = vrcp.f32 %v984_v44 }
 0xc89   :  { %1431 = vpow2.f32 %v1305_v55 }
 0xc95   :  { %v1430_v46 = vpop.eup %1429 }
 0xc96   :  { %v995_v53 = vmul.f32 %v1430_v46, %v1428_v47  ;;  %v994_v54 = vmul.f32 %v1430_v46, %v992_v49  ;;  %v1432_v56 = vpop.eup %1431  ;;  %v1141_v47 = vrot.slane %v1129_v33, 2  ;;  %v1158_v49 = vsel %vm1152_vm6, %v1130_v31, %v1144_v28 }
 0xc97   :  { %v985_v58 = vadd.f32 1.0, %v1432_v56 }
 0xc98   :  { %997 = vrot.lane.b32.xlu0 %v995_v53, %s1567_s2 }
 0xc99   :  { %1433 = vrcp.f32 %v985_v58 }
 0xca6   :  { %v1434_v61 = vpop.eup %1433 }
 0xd0a   :  { %v998_v59 = vpop.permute.xlu0 %997 }
 0xd0b   :  { %v1000_v60 = vadd.f32 %v998_v59, %v994_v54 }
 0xd0d   :  { %1435 = vtanh.f32 %v1000_v60  ;;  %v1102_v23 = vrot.slane %v1000_v60, 6 }
 0xd1a   :  { %v1436_v62 = vpop.eup %1435 }
 0xd1b   :  { %v1002_v63 = vmul.f32 %v1436_v62, %v1434_v61 }
 0xd1d   :  { %v1004_v2 = vrot.slane %v1002_v63, 4 }
 0xd1f   :  { %1005 = vrot.lane.b32.xlu1 %v1004_v2, %s1567_s2 }
 0xd91   :  { %v1006_v3 = vpop.permute.xlu1 %1005 }
 0xd92   :  { %1306 = vmatmul.mubr.msk.f32.vlgmr.msra.gmra.mxu1 %vm252_vm2, %v1006_v3  ;;  %v1132_v22 = vsel %vm1113_vm5, %v1006_v3, %v1741_v35  ;;  %v1123_v27 = vsel %vm1113_vm5, %v1741_v35, %v1006_v3 }
 0xd93   :  { %v1147_v40 = vrot.slane %v1132_v22, 4  ;;  %v1135_v37 = vrot.slane %v1123_v27, 6 }
 0xd95   :  { %v1159_v53 = vsel %vm1154_vm7, %v1158_v49, %v1147_v40 }
 0xe52   :  { %v1075_v4 = vpop.f32.mrf.mxu1 }
 0xe53   :  { %v1082_v5 = vrot.slane %v1075_v4, 2 }
 0xe54   :  { %v1077_v9 = vpop.f32.mrf.mxu1 }
 0xe55   :  { %v1086_v6 = vadd.f32 %v1082_v5, %v1816_v57  ;;  %v1083_v10 = vrot.slane %v1077_v9, 2  ;;  %v1166_v57 = vld [vmem:[#allocation8 + $0x28] sm:$0xff] }
 0xe56   :  { %1326 = vmatprep.subr.mxu0 %v1166_v57 }
 0xe57   :  { %v1307_v7 = vmul.f32 -1.442695, %v1086_v6  ;;  %v1087_v11 = vadd.f32 %v1083_v10, %v1818_v52  ;;  %1327 = vmatpush3.msra.mxu0 %v1166_v57  ;;  %v1164_v52 = vld [vmem:[#allocation8 + $0x18] sm:$0xff] }
 0xe58   :  { %1328 = vmatprep.subr.mxu0 %v1165_v34 }
 0xe59   :  { %1437 = vpow2.f32 %v1307_v7  ;;  %1329 = vmatpush3.msra.mxu0 %v1165_v34  ;;  %v1308_v39 = vmul.f32 -1.442695, %v1087_v11 }
 0xe5a   :  { %1439 = vtanh.f32 %v1087_v11  ;;  %1330 = vmatprep.subr.mxu0 %v1164_v52 }
 0xe5b   :  { %1331 = vmatpush3.msra.mxu0 %v1164_v52 }
 0xe5c   :  { %1332 = vmatprep.subr.mxu0 %v1163_v36 }
 0xe5d   :  { %1333 = vmatpush3.msra.mxu0 %v1163_v36 }
 0xe5e   :  { %1334 = vmatprep.subr.mxu0 %v1162_v51 }
 0xe5f   :  { %1335 = vmatpush3.msra.mxu0 %v1162_v51 }
 0xe60   :  { %1336 = vmatprep.subr.mxu0 %v1161_v14 }
 0xe61   :  { %1337 = vmatpush3.msra.mxu0 %v1161_v14 }
 0xe66   :  { %v1438_v12 = vpop.eup %1437 }
 0xe67   :  { %v1094_v0 = vadd.f32 1.0, %v1438_v12  ;;  %v1440_v21 = vpop.eup %1439 }
 0xe69   :  { %1441 = vrcp.f32 %v1094_v0 }
 0xe6a   :  { %1443 = vpow2.f32 %v1308_v39 }
 0xe76   :  { %v1442_v24 = vpop.eup %1441 }
 0xe77   :  { %v1105_v26 = vmul.f32 %v1442_v24, %v1440_v21  ;;  %v1104_v29 = vmul.f32 %v1442_v24, %v1102_v23  ;;  %v1444_v41 = vpop.eup %1443 }
 0xe78   :  { %v1095_v43 = vadd.f32 1.0, %v1444_v41 }
 0xe79   :  { %1107 = vrot.lane.b32.xlu0 %v1105_v26, %s1567_s2 }
 0xe7a   :  { %1445 = vrcp.f32 %v1095_v43 }
 0xe87   :  { %v1446_v15 = vpop.eup %1445 }
 0xeeb   :  { %v1108_v45 = vpop.permute.xlu0 %1107 }
 0xeec   :  { %v1110_v48 = vadd.f32 %v1108_v45, %v1104_v29 }
 0xeee   :  { %1447 = vtanh.f32 %v1110_v48 }
 0xefb   :  { %v1448_v16 = vpop.eup %1447 }
 0xefc   :  { %v1112_v17 = vmul.f32 %v1448_v16, %v1446_v15 }
 0xefe   :  { %v1116_v18 = vrot.slane %v1112_v17, 6 }
 0xf00   :  { %1117 = vrot.lane.b32.xlu1 %v1116_v18, %s1567_s2 }
 0xf72   :  { %v1118_v38 = vpop.permute.xlu1 %1117 }
 0xf73   :  { %v1120_v44 = vsel %vm1113_vm5, %v1716_v1, %v1118_v38  ;;  %v1133_v35 = vsel %vm1113_vm5, %v1118_v38, %v1716_v1 }
 0xf74   :  { %v1150_v8 = vrot.slane %v1133_v35, 2  ;;  %v1153_v25 = vsel %vm1152_vm6, %v1120_v44, %v1135_v37 }
 0xf75   :  { %v1155_v46 = vsel %vm1154_vm7, %v1153_v25, %v1138_v42 }
 0xf76   :  { %v1157_v54 = vsel %vm1156_vm8, %v1155_v46, %v1141_v47  ;;  %v1160_v55 = vsel %vm1156_vm8, %v1159_v53, %v1150_v8 }
 0xf77   :  { %1338 = vmatprep.mubr.msk.f32.mxu0 %vm252_vm2, %v1157_v54 }
 0xf78   :  { %1339 = vmatmul.mubr.msk.f32.vlgmr.msra.gmra.mxu0 %vm252_vm2, %v1160_v55 }
0x1038   :  { %v1340_v13 = vpop.f32.mrf.mxu0 }
0x1039   :  { %v1254_v1 = vadd.f32 %v1340_v13, %v1309_v50 }
0x103a   :  { %v1248_v56 = vpop.f32.mrf.mxu0 }
0x103b   :  { %1258 = vst [vmem:[#allocation10 + $0x8] sm:$0xff] %v1254_v1  ;;  %v1249_v58 = vadd.f32 %v1309_v50, %v1248_v56 }
0x103d   :  { %1257 = vst [vmem:[#allocation10] sm:$0xff] %v1249_v58 }
0x103e   :  { %1540 = shalt.err (!%p1537_p10)
}
0x103f   :  { %1270 = dma.vmem_to_hbm [thread:$0]  %s1265_s17, 256, %s1890_s5, [#allocation4], %s1563_s0, %s1563_s0, %s1564_s12  }
0x1040   :  { %1555 = dma.done.wait [#allocation4], 256  }
0x1041   :  { %1556 = vsyncadd [#allocation4], 4294967040 }
0x1042   :  { %1274 = vsyncpa [#allocation3], 1 }
0x1043   :  { %1275 = vsyncpa [#allocation6], 1 }
0x1044   :  { %1276 = vsyncpa [#allocation9], 1 }
0x1045   :  { %1277 = vsyncpa [#allocation4], 1 }

</bundles_post_ra>
